<compile_context>
chip_gen: v5e
topology: v5e:2x2
jax: 0.10.0
libtpu: 0.0.40
codegen_flags: <defaults>
</compile_context>

<pallas_src>
import functools
import math

import jax
import jax.numpy as jnp
from jax.experimental import pallas as pl
from jax.experimental.pallas import tpu as pltpu


def _mha_concat_kernel(q_ref, k_ref, v_ref, wqt_ref, wkt_ref, wvt_ref, o_ref,
                       *, num_heads, embed_dim, compute_dtype):
    """One grid step = `batch_block` batch elements.

    Refs:
      q_ref/k_ref/v_ref : (BB, S, E)    activations (already in compute dtype)
      wqt/wkt/wvt_ref   : (E, H*E)      stacked, pre-transposed per-head
                                        weights (column block h == W_h.T)
      o_ref             : (BB, S, H*E)  concatenated per-head attention
                                        outputs, f32 (H*E = 128: lane-dense)
    """
    E = embed_dim
    H = num_heads
    BB = q_ref.shape[0]
    cd = compute_dtype
    scale = 1.0 / math.sqrt(float(E))

    # Hoist the weight loads out of the batch loop (read once per grid step).
    wqt = wqt_ref[...]
    wkt = wkt_ref[...]
    wvt = wvt_ref[...]

    for b in range(BB):  # static unroll; BB is 1 (v7x) or B (single-TC chips)
        # One wide, lane-dense projection per input: (S, E) @ (E, H*E).
        qh_all = jnp.dot(q_ref[b], wqt, preferred_element_type=jnp.float32)
        kh_all = jnp.dot(k_ref[b], wkt, preferred_element_type=jnp.float32)
        vh_all = jnp.dot(v_ref[b], wvt, preferred_element_type=jnp.float32)

        for h in range(H):  # static unroll over heads (toy H=4)
            sl = slice(h * E, (h + 1) * E)
            qh = qh_all[:, sl].astype(cd)
            kh = kh_all[:, sl].astype(cd)
            vh = vh_all[:, sl].astype(cd)

            # energy / sqrt(E); contract the embed axis of both operands
            # (no explicit transpose inside the kernel).
            scores = jax.lax.dot_general(
                qh, kh, (((1,), (1,)), ((), ())),
                preferred_element_type=jnp.float32) * scale  # (S_q, S_k) f32

            # torch.softmax(att, dim=1): softmax over the QUERY axis (axis 0
            # of the (S_q, S_k) tile).  Kept in f32 even when the MXU is fed
            # bf16 (v5e has no bf16 VPU/EUP path).
            m = jnp.max(scores, axis=0, keepdims=True)
            e = jnp.exp(scores - m)
            p = e * pl.reciprocal(jnp.sum(e, axis=0, keepdims=True),
                                  approx=False)

            head = jnp.dot(p.astype(cd), vh,
                           preferred_element_type=jnp.float32)  # (S, E) f32

            # Write head h into its static column block of the lane-dense
            # (S, H*E) output slab; the HBM writeback of the whole block is an
            # unmasked, lane-dense store.
            o_ref[b, :, sl] = head.astype(o_ref.dtype)


def _default_batch_block(batch):
    """Grid policy: one batch element per step on multi-TC chips (v7x /
    megacore) so the "parallel" axis feeds every core; collapse to a single
    step on single-TC chips (v5e/v6e) where the grid is a serial loop."""
    try:
        kind = jax.devices()[0].device_kind.lower()
    except Exception:
        kind = ""
    multi_tc = any(tag in kind for tag in ("v7", "v4", "v3"))
    return 1 if multi_tc else batch


def multi_head_attention(q, k, v, wq, wk, wv, wo, bo, *, num_heads, embed_dim,
                         compute_dtype=jnp.float32, batch_block=None,
                         vmem_limit_bytes=None):
    B, S, E = q.shape
    H = num_heads
    assert E == embed_dim
    assert wq.shape == (H, E, E) and wk.shape == (H, E, E) and wv.shape == (H, E, E)
    assert wo.shape == (E, H * E) and bo.shape == (E,)

    if batch_block is None:
        batch_block = _default_batch_block(B)
    if B % batch_block != 0:
        batch_block = 1
    grid = (B // batch_block,)

    # Pre-transpose / stack weights ONCE in XLA and cast them to the MXU feed
    # dtype there:  wq_t[:, h*E:(h+1)*E] == wq[h].T  -> kernel does q @ wq_t.
    wq_t = jnp.transpose(wq, (2, 0, 1)).reshape(E, H * E).astype(compute_dtype)
    wk_t = jnp.transpose(wk, (2, 0, 1)).reshape(E, H * E).astype(compute_dtype)
    wv_t = jnp.transpose(wv, (2, 0, 1)).reshape(E, H * E).astype(compute_dtype)
    # Casting activations in the wrapper too halves kernel HBM reads when
    # compute_dtype is bf16 (no-op for the f32 default).
    qc = q.astype(compute_dtype)
    kc = k.astype(compute_dtype)
    vc = v.astype(compute_dtype)

    kernel = functools.partial(_mha_concat_kernel, num_heads=H, embed_dim=E,
                               compute_dtype=compute_dtype)

    concat = pl.pallas_call(
        kernel,
        out_shape=jax.ShapeDtypeStruct((B, S, H * E), jnp.float32),
        grid_spec=pltpu.PrefetchScalarGridSpec(
            num_scalar_prefetch=0,
            grid=grid,
            in_specs=[
                pl.BlockSpec((batch_block, S, E), lambda i: (i, 0, 0)),   # q
                pl.BlockSpec((batch_block, S, E), lambda i: (i, 0, 0)),   # k
                pl.BlockSpec((batch_block, S, E), lambda i: (i, 0, 0)),   # v
                pl.BlockSpec((E, H * E), lambda i: (0, 0)),               # Wq^T
                pl.BlockSpec((E, H * E), lambda i: (0, 0)),               # Wk^T
                pl.BlockSpec((E, H * E), lambda i: (0, 0)),               # Wv^T
            ],
            out_specs=pl.BlockSpec((batch_block, S, H * E),
                                   lambda i: (i, 0, 0)),
        ),
        compiler_params=pltpu.CompilerParams(
            dimension_semantics=("parallel",),
            vmem_limit_bytes=vmem_limit_bytes),
    )(qc, kc, vc, wq_t, wk_t, wv_t)

    # Final output projection + bias in XLA: keeps the kernel's output store
    # lane-dense (E=32 < 128 lanes would force masked partial stores).
    out = concat @ wo.T.astype(jnp.float32) + bo.astype(jnp.float32)
    return out.astype(q.dtype)


def _reference(q, k, v, wq, wk, wv, wo, bo, *, num_heads, embed_dim):
    """Pure-JAX mirror of the PyTorch forward, for correctness checking."""
    outs = []
    for h in range(num_heads):
        qh = q @ wq[h].T
        kh = k @ wk[h].T
        vh = v @ wv[h].T
        energy = jnp.einsum("bqe,bke->bqk", qh, kh)
        att = energy / (embed_dim ** 0.5)
        sm = jax.nn.softmax(att, axis=1)  # dim=1, as in the PyTorch code
        outs.append(jnp.einsum("bqk,bke->bqe", sm, vh))
    concat = jnp.concatenate(outs, axis=2)
    return concat @ wo.T + bo


if __name__ == "__main__":
    B, S, E, H = 2, 8, 32, 4  # batch, seq, embed_dim, num_heads

    key = jax.random.PRNGKey(0)
    keys = jax.random.split(key, 8)

    q = jax.random.normal(keys[0], (B, S, E), dtype=jnp.float32)
    k = jax.random.normal(keys[1], (B, S, E), dtype=jnp.float32)
    v = jax.random.normal(keys[2], (B, S, E), dtype=jnp.float32)

    # Deterministic synthetic parameters (nn.Linear-style: bias=False for the
    # per-head projections, bias on the output projection).
    scale_in = 1.0 / math.sqrt(E)
    wq = jax.random.uniform(keys[3], (H, E, E), jnp.float32, -scale_in, scale_in)
    wk = jax.random.uniform(keys[4], (H, E, E), jnp.float32, -scale_in, scale_in)
    wv = jax.random.uniform(keys[5], (H, E, E), jnp.float32, -scale_in, scale_in)
    scale_out = 1.0 / math.sqrt(E * H)
    wo = jax.random.uniform(keys[6], (E, E * H), jnp.float32, -scale_out, scale_out)
    bo = jax.random.uniform(keys[7], (E,), jnp.float32, -scale_out, scale_out)

    ref = _reference(q, k, v, wq, wk, wv, wo, bo, num_heads=H, embed_dim=E)

    # f32 path (default): tight parity with the PyTorch module semantics.
    out = multi_head_attention(q, k, v, wq, wk, wv, wo, bo,
                               num_heads=H, embed_dim=E)
    out = jax.block_until_ready(out)
    assert out.shape == (B, S, E), out.shape
    assert jnp.allclose(out, ref, atol=2e-3, rtol=2e-3), (
        float(jnp.max(jnp.abs(out - ref))))

    # bf16 MXU-feed path (recommended for production): matmul operands bf16,
    # f32 accumulation and f32 softmax math; looser tolerance by construction.
    out_bf16 = multi_head_attention(q, k, v, wq, wk, wv, wo, bo,
                                    num_heads=H, embed_dim=E,
                                    compute_dtype=jnp.bfloat16)
    out_bf16 = jax.block_until_ready(out_bf16)
    assert out_bf16.shape == (B, S, E), out_bf16.shape
    assert jnp.allclose(out_bf16, ref, atol=5e-2, rtol=5e-2), (
        float(jnp.max(jnp.abs(out_bf16 - ref))))

    print("KERNEL_OK")
</pallas_src>

<mosaic_0001>
module attributes {stable_mosaic.version = 11 : i64} {
  func.func @_mha_concat_kernel(%arg0: i32, %arg1: memref<2x8x32xf32, #tpu.memory_space<vmem>>, %arg2: memref<2x8x32xf32, #tpu.memory_space<vmem>>, %arg3: memref<2x8x32xf32, #tpu.memory_space<vmem>>, %arg4: memref<32x128xf32, #tpu.memory_space<vmem>>, %arg5: memref<32x128xf32, #tpu.memory_space<vmem>>, %arg6: memref<32x128xf32, #tpu.memory_space<vmem>>, %arg7: memref<2x8x128xf32, #tpu.memory_space<vmem>>) attributes {dimension_semantics = [#tpu.dimension_semantics<parallel>], iteration_bounds = array<i64: 1>, scalar_prefetch = 0 : i64, scratch_operands = 0 : i64, tpu.core_type = #tpu.core_type<tc>, window_params = [{transform_indices = @transform_0, window_bounds = array<i64: 2, 8, 32>}, {transform_indices = @transform_1, window_bounds = array<i64: 2, 8, 32>}, {transform_indices = @transform_2, window_bounds = array<i64: 2, 8, 32>}, {pipeline_mode = #tpu.pipeline_mode<synchronous>, transform_indices = @transform_3, window_bounds = array<i64: 32, 128>}, {pipeline_mode = #tpu.pipeline_mode<synchronous>, transform_indices = @transform_4, window_bounds = array<i64: 32, 128>}, {pipeline_mode = #tpu.pipeline_mode<synchronous>, transform_indices = @transform_5, window_bounds = array<i64: 32, 128>}, {transform_indices = @transform_6, window_bounds = array<i64: 2, 8, 128>}]} {
    %c0 = arith.constant 0 : index
    %c0_0 = arith.constant 0 : index
    %0 = vector.load %arg4[%c0, %c0_0] : memref<32x128xf32, #tpu.memory_space<vmem>>, vector<32x128xf32>
    %c0_1 = arith.constant 0 : index
    %c0_2 = arith.constant 0 : index
    %1 = vector.load %arg5[%c0_1, %c0_2] : memref<32x128xf32, #tpu.memory_space<vmem>>, vector<32x128xf32>
    %c0_3 = arith.constant 0 : index
    %c0_4 = arith.constant 0 : index
    %2 = vector.load %arg6[%c0_3, %c0_4] : memref<32x128xf32, #tpu.memory_space<vmem>>, vector<32x128xf32>
    %c0_5 = arith.constant 0 : index
    %c0_6 = arith.constant 0 : index
    %c0_7 = arith.constant 0 : index
    %3 = vector.load %arg1[%c0_5, %c0_6, %c0_7] : memref<2x8x32xf32, #tpu.memory_space<vmem>>, vector<1x8x32xf32>
    %4 = vector.shape_cast %3 : vector<1x8x32xf32> to vector<8x32xf32>
    %cst = arith.constant dense<0.000000e+00> : vector<8x128xf32>
    %5 = tpu.matmul %4, %0, %cst {dimension_numbers = #tpu.dot_dimension_numbers<[1], [0], [0], [1], [0, 0, 1, 1], [], []>} : vector<8x32xf32>, vector<32x128xf32>, vector<8x128xf32> -> vector<8x128xf32>
    %c0_8 = arith.constant 0 : index
    %c0_9 = arith.constant 0 : index
    %c0_10 = arith.constant 0 : index
    %6 = vector.load %arg2[%c0_8, %c0_9, %c0_10] : memref<2x8x32xf32, #tpu.memory_space<vmem>>, vector<1x8x32xf32>
    %7 = vector.shape_cast %6 : vector<1x8x32xf32> to vector<8x32xf32>
    %cst_11 = arith.constant dense<0.000000e+00> : vector<8x128xf32>
    %8 = tpu.matmul %7, %1, %cst_11 {dimension_numbers = #tpu.dot_dimension_numbers<[1], [0], [0], [1], [0, 0, 1, 1], [], []>} : vector<8x32xf32>, vector<32x128xf32>, vector<8x128xf32> -> vector<8x128xf32>
    %c0_12 = arith.constant 0 : index
    %c0_13 = arith.constant 0 : index
    %c0_14 = arith.constant 0 : index
    %9 = vector.load %arg3[%c0_12, %c0_13, %c0_14] : memref<2x8x32xf32, #tpu.memory_space<vmem>>, vector<1x8x32xf32>
    %10 = vector.shape_cast %9 : vector<1x8x32xf32> to vector<8x32xf32>
    %cst_15 = arith.constant dense<0.000000e+00> : vector<8x128xf32>
    %11 = tpu.matmul %10, %2, %cst_15 {dimension_numbers = #tpu.dot_dimension_numbers<[1], [0], [0], [1], [0, 0, 1, 1], [], []>} : vector<8x32xf32>, vector<32x128xf32>, vector<8x128xf32> -> vector<8x128xf32>
    %12 = vector.extract_strided_slice %5 {offsets = [0, 0], sizes = [8, 32], strides = [1, 1]} : vector<8x128xf32> to vector<8x32xf32>
    %13 = vector.extract_strided_slice %8 {offsets = [0, 0], sizes = [8, 32], strides = [1, 1]} : vector<8x128xf32> to vector<8x32xf32>
    %14 = vector.extract_strided_slice %11 {offsets = [0, 0], sizes = [8, 32], strides = [1, 1]} : vector<8x128xf32> to vector<8x32xf32>
    %cst_16 = arith.constant dense<0.000000e+00> : vector<8x8xf32>
    %15 = tpu.matmul %12, %13, %cst_16 {dimension_numbers = #tpu.dot_dimension_numbers<[1], [1], [0], [0], [0, 0, 1, 0], [], []>} : vector<8x32xf32>, vector<8x32xf32>, vector<8x8xf32> -> vector<8x8xf32>
    %cst_17 = arith.constant 0.176776692 : f32
    %16 = vector.broadcast %cst_17 : f32 to vector<8x8xf32>
    %17 = arith.mulf %15, %16 : vector<8x8xf32>
    %cst_18 = arith.constant dense<0xFF800000> : vector<8xf32>
    %18 = vector.multi_reduction <maximumf>, %17, %cst_18 [0] : vector<8x8xf32> to vector<8xf32>
    %19 = vector.shape_cast %18 : vector<8xf32> to vector<1x8xf32>
    %20 = vector.broadcast %19 : vector<1x8xf32> to vector<8x8xf32>
    %21 = arith.subf %17, %20 : vector<8x8xf32>
    %22 = math.exp %21 : vector<8x8xf32>
    %cst_19 = arith.constant dense<0.000000e+00> : vector<8xf32>
    %23 = vector.multi_reduction <add>, %22, %cst_19 [0] : vector<8x8xf32> to vector<8xf32>
    %24 = vector.shape_cast %23 : vector<8xf32> to vector<1x8xf32>
    %25 = tpu.reciprocal %24 : vector<1x8xf32> -> vector<1x8xf32>
    %26 = vector.broadcast %25 : vector<1x8xf32> to vector<8x8xf32>
    %27 = arith.mulf %22, %26 : vector<8x8xf32>
    %cst_20 = arith.constant dense<0.000000e+00> : vector<8x32xf32>
    %28 = tpu.matmul %27, %14, %cst_20 {dimension_numbers = #tpu.dot_dimension_numbers<[1], [0], [0], [1], [0, 0, 1, 1], [], []>} : vector<8x8xf32>, vector<8x32xf32>, vector<8x32xf32> -> vector<8x32xf32>
    %c0_21 = arith.constant 0 : index
    %c0_22 = arith.constant 0 : index
    %c0_23 = arith.constant 0 : index
    %29 = vector.load %arg7[%c0_21, %c0_22, %c0_23] : memref<2x8x128xf32, #tpu.memory_space<vmem>>, vector<1x8x32xf32>
    %30 = vector.shape_cast %29 : vector<1x8x32xf32> to vector<8x32xf32>
    %31 = vector.shape_cast %28 : vector<8x32xf32> to vector<1x8x32xf32>
    tpu.vector_store %arg7[%c0_21, %c0_22, %c0_23], %31 {strides = array<i32>} : memref<2x8x128xf32, #tpu.memory_space<vmem>>, vector<1x8x32xf32>,
    %32 = vector.extract_strided_slice %5 {offsets = [0, 32], sizes = [8, 32], strides = [1, 1]} : vector<8x128xf32> to vector<8x32xf32>
    %33 = vector.extract_strided_slice %8 {offsets = [0, 32], sizes = [8, 32], strides = [1, 1]} : vector<8x128xf32> to vector<8x32xf32>
    %34 = vector.extract_strided_slice %11 {offsets = [0, 32], sizes = [8, 32], strides = [1, 1]} : vector<8x128xf32> to vector<8x32xf32>
    %cst_24 = arith.constant dense<0.000000e+00> : vector<8x8xf32>
    %35 = tpu.matmul %32, %33, %cst_24 {dimension_numbers = #tpu.dot_dimension_numbers<[1], [1], [0], [0], [0, 0, 1, 0], [], []>} : vector<8x32xf32>, vector<8x32xf32>, vector<8x8xf32> -> vector<8x8xf32>
    %cst_25 = arith.constant 0.176776692 : f32
    %36 = vector.broadcast %cst_25 : f32 to vector<8x8xf32>
    %37 = arith.mulf %35, %36 : vector<8x8xf32>
    %cst_26 = arith.constant dense<0xFF800000> : vector<8xf32>
    %38 = vector.multi_reduction <maximumf>, %37, %cst_26 [0] : vector<8x8xf32> to vector<8xf32>
    %39 = vector.shape_cast %38 : vector<8xf32> to vector<1x8xf32>
    %40 = vector.broadcast %39 : vector<1x8xf32> to vector<8x8xf32>
    %41 = arith.subf %37, %40 : vector<8x8xf32>
    %42 = math.exp %41 : vector<8x8xf32>
    %cst_27 = arith.constant dense<0.000000e+00> : vector<8xf32>
    %43 = vector.multi_reduction <add>, %42, %cst_27 [0] : vector<8x8xf32> to vector<8xf32>
    %44 = vector.shape_cast %43 : vector<8xf32> to vector<1x8xf32>
    %45 = tpu.reciprocal %44 : vector<1x8xf32> -> vector<1x8xf32>
    %46 = vector.broadcast %45 : vector<1x8xf32> to vector<8x8xf32>
    %47 = arith.mulf %42, %46 : vector<8x8xf32>
    %cst_28 = arith.constant dense<0.000000e+00> : vector<8x32xf32>
    %48 = tpu.matmul %47, %34, %cst_28 {dimension_numbers = #tpu.dot_dimension_numbers<[1], [0], [0], [1], [0, 0, 1, 1], [], []>} : vector<8x8xf32>, vector<8x32xf32>, vector<8x32xf32> -> vector<8x32xf32>
    %c0_29 = arith.constant 0 : index
    %c0_30 = arith.constant 0 : index
    %c32 = arith.constant 32 : index
    %49 = vector.load %arg7[%c0_29, %c0_30, %c32] : memref<2x8x128xf32, #tpu.memory_space<vmem>>, vector<1x8x32xf32>
    %50 = vector.shape_cast %49 : vector<1x8x32xf32> to vector<8x32xf32>
    %51 = vector.shape_cast %48 : vector<8x32xf32> to vector<1x8x32xf32>
    tpu.vector_store %arg7[%c0_29, %c0_30, %c32], %51 {strides = array<i32>} : memref<2x8x128xf32, #tpu.memory_space<vmem>>, vector<1x8x32xf32>,
    %52 = vector.extract_strided_slice %5 {offsets = [0, 64], sizes = [8, 32], strides = [1, 1]} : vector<8x128xf32> to vector<8x32xf32>
    %53 = vector.extract_strided_slice %8 {offsets = [0, 64], sizes = [8, 32], strides = [1, 1]} : vector<8x128xf32> to vector<8x32xf32>
    %54 = vector.extract_strided_slice %11 {offsets = [0, 64], sizes = [8, 32], strides = [1, 1]} : vector<8x128xf32> to vector<8x32xf32>
    %cst_31 = arith.constant dense<0.000000e+00> : vector<8x8xf32>
    %55 = tpu.matmul %52, %53, %cst_31 {dimension_numbers = #tpu.dot_dimension_numbers<[1], [1], [0], [0], [0, 0, 1, 0], [], []>} : vector<8x32xf32>, vector<8x32xf32>, vector<8x8xf32> -> vector<8x8xf32>
    %cst_32 = arith.constant 0.176776692 : f32
    %56 = vector.broadcast %cst_32 : f32 to vector<8x8xf32>
    %57 = arith.mulf %55, %56 : vector<8x8xf32>
    %cst_33 = arith.constant dense<0xFF800000> : vector<8xf32>
    %58 = vector.multi_reduction <maximumf>, %57, %cst_33 [0] : vector<8x8xf32> to vector<8xf32>
    %59 = vector.shape_cast %58 : vector<8xf32> to vector<1x8xf32>
    %60 = vector.broadcast %59 : vector<1x8xf32> to vector<8x8xf32>
    %61 = arith.subf %57, %60 : vector<8x8xf32>
    %62 = math.exp %61 : vector<8x8xf32>
    %cst_34 = arith.constant dense<0.000000e+00> : vector<8xf32>
    %63 = vector.multi_reduction <add>, %62, %cst_34 [0] : vector<8x8xf32> to vector<8xf32>
    %64 = vector.shape_cast %63 : vector<8xf32> to vector<1x8xf32>
    %65 = tpu.reciprocal %64 : vector<1x8xf32> -> vector<1x8xf32>
    %66 = vector.broadcast %65 : vector<1x8xf32> to vector<8x8xf32>
    %67 = arith.mulf %62, %66 : vector<8x8xf32>
    %cst_35 = arith.constant dense<0.000000e+00> : vector<8x32xf32>
    %68 = tpu.matmul %67, %54, %cst_35 {dimension_numbers = #tpu.dot_dimension_numbers<[1], [0], [0], [1], [0, 0, 1, 1], [], []>} : vector<8x8xf32>, vector<8x32xf32>, vector<8x32xf32> -> vector<8x32xf32>
    %c0_36 = arith.constant 0 : index
    %c0_37 = arith.constant 0 : index
    %c64 = arith.constant 64 : index
    %69 = vector.load %arg7[%c0_36, %c0_37, %c64] : memref<2x8x128xf32, #tpu.memory_space<vmem>>, vector<1x8x32xf32>
    %70 = vector.shape_cast %69 : vector<1x8x32xf32> to vector<8x32xf32>
    %71 = vector.shape_cast %68 : vector<8x32xf32> to vector<1x8x32xf32>
    tpu.vector_store %arg7[%c0_36, %c0_37, %c64], %71 {strides = array<i32>} : memref<2x8x128xf32, #tpu.memory_space<vmem>>, vector<1x8x32xf32>,
    %72 = vector.extract_strided_slice %5 {offsets = [0, 96], sizes = [8, 32], strides = [1, 1]} : vector<8x128xf32> to vector<8x32xf32>
    %73 = vector.extract_strided_slice %8 {offsets = [0, 96], sizes = [8, 32], strides = [1, 1]} : vector<8x128xf32> to vector<8x32xf32>
    %74 = vector.extract_strided_slice %11 {offsets = [0, 96], sizes = [8, 32], strides = [1, 1]} : vector<8x128xf32> to vector<8x32xf32>
    %cst_38 = arith.constant dense<0.000000e+00> : vector<8x8xf32>
    %75 = tpu.matmul %72, %73, %cst_38 {dimension_numbers = #tpu.dot_dimension_numbers<[1], [1], [0], [0], [0, 0, 1, 0], [], []>} : vector<8x32xf32>, vector<8x32xf32>, vector<8x8xf32> -> vector<8x8xf32>
    %cst_39 = arith.constant 0.176776692 : f32
    %76 = vector.broadcast %cst_39 : f32 to vector<8x8xf32>
    %77 = arith.mulf %75, %76 : vector<8x8xf32>
    %cst_40 = arith.constant dense<0xFF800000> : vector<8xf32>
    %78 = vector.multi_reduction <maximumf>, %77, %cst_40 [0] : vector<8x8xf32> to vector<8xf32>
    %79 = vector.shape_cast %78 : vector<8xf32> to vector<1x8xf32>
    %80 = vector.broadcast %79 : vector<1x8xf32> to vector<8x8xf32>
    %81 = arith.subf %77, %80 : vector<8x8xf32>
    %82 = math.exp %81 : vector<8x8xf32>
    %cst_41 = arith.constant dense<0.000000e+00> : vector<8xf32>
    %83 = vector.multi_reduction <add>, %82, %cst_41 [0] : vector<8x8xf32> to vector<8xf32>
    %84 = vector.shape_cast %83 : vector<8xf32> to vector<1x8xf32>
    %85 = tpu.reciprocal %84 : vector<1x8xf32> -> vector<1x8xf32>
    %86 = vector.broadcast %85 : vector<1x8xf32> to vector<8x8xf32>
    %87 = arith.mulf %82, %86 : vector<8x8xf32>
    %cst_42 = arith.constant dense<0.000000e+00> : vector<8x32xf32>
    %88 = tpu.matmul %87, %74, %cst_42 {dimension_numbers = #tpu.dot_dimension_numbers<[1], [0], [0], [1], [0, 0, 1, 1], [], []>} : vector<8x8xf32>, vector<8x32xf32>, vector<8x32xf32> -> vector<8x32xf32>
    %c0_43 = arith.constant 0 : index
    %c0_44 = arith.constant 0 : index
    %c96 = arith.constant 96 : index
    %89 = vector.load %arg7[%c0_43, %c0_44, %c96] : memref<2x8x128xf32, #tpu.memory_space<vmem>>, vector<1x8x32xf32>
    %90 = vector.shape_cast %89 : vector<1x8x32xf32> to vector<8x32xf32>
    %91 = vector.shape_cast %88 : vector<8x32xf32> to vector<1x8x32xf32>
    tpu.vector_store %arg7[%c0_43, %c0_44, %c96], %91 {strides = array<i32>} : memref<2x8x128xf32, #tpu.memory_space<vmem>>, vector<1x8x32xf32>,
    %c1 = arith.constant 1 : index
    %c0_45 = arith.constant 0 : index
    %c0_46 = arith.constant 0 : index
    %92 = vector.load %arg1[%c1, %c0_45, %c0_46] : memref<2x8x32xf32, #tpu.memory_space<vmem>>, vector<1x8x32xf32>
    %93 = vector.shape_cast %92 : vector<1x8x32xf32> to vector<8x32xf32>
    %cst_47 = arith.constant dense<0.000000e+00> : vector<8x128xf32>
    %94 = tpu.matmul %93, %0, %cst_47 {dimension_numbers = #tpu.dot_dimension_numbers<[1], [0], [0], [1], [0, 0, 1, 1], [], []>} : vector<8x32xf32>, vector<32x128xf32>, vector<8x128xf32> -> vector<8x128xf32>
    %c1_48 = arith.constant 1 : index
    %c0_49 = arith.constant 0 : index
    %c0_50 = arith.constant 0 : index
    %95 = vector.load %arg2[%c1_48, %c0_49, %c0_50] : memref<2x8x32xf32, #tpu.memory_space<vmem>>, vector<1x8x32xf32>
    %96 = vector.shape_cast %95 : vector<1x8x32xf32> to vector<8x32xf32>
    %cst_51 = arith.constant dense<0.000000e+00> : vector<8x128xf32>
    %97 = tpu.matmul %96, %1, %cst_51 {dimension_numbers = #tpu.dot_dimension_numbers<[1], [0], [0], [1], [0, 0, 1, 1], [], []>} : vector<8x32xf32>, vector<32x128xf32>, vector<8x128xf32> -> vector<8x128xf32>
    %c1_52 = arith.constant 1 : index
    %c0_53 = arith.constant 0 : index
    %c0_54 = arith.constant 0 : index
    %98 = vector.load %arg3[%c1_52, %c0_53, %c0_54] : memref<2x8x32xf32, #tpu.memory_space<vmem>>, vector<1x8x32xf32>
    %99 = vector.shape_cast %98 : vector<1x8x32xf32> to vector<8x32xf32>
    %cst_55 = arith.constant dense<0.000000e+00> : vector<8x128xf32>
    %100 = tpu.matmul %99, %2, %cst_55 {dimension_numbers = #tpu.dot_dimension_numbers<[1], [0], [0], [1], [0, 0, 1, 1], [], []>} : vector<8x32xf32>, vector<32x128xf32>, vector<8x128xf32> -> vector<8x128xf32>
    %101 = vector.extract_strided_slice %94 {offsets = [0, 0], sizes = [8, 32], strides = [1, 1]} : vector<8x128xf32> to vector<8x32xf32>
    %102 = vector.extract_strided_slice %97 {offsets = [0, 0], sizes = [8, 32], strides = [1, 1]} : vector<8x128xf32> to vector<8x32xf32>
    %103 = vector.extract_strided_slice %100 {offsets = [0, 0], sizes = [8, 32], strides = [1, 1]} : vector<8x128xf32> to vector<8x32xf32>
    %cst_56 = arith.constant dense<0.000000e+00> : vector<8x8xf32>
    %104 = tpu.matmul %101, %102, %cst_56 {dimension_numbers = #tpu.dot_dimension_numbers<[1], [1], [0], [0], [0, 0, 1, 0], [], []>} : vector<8x32xf32>, vector<8x32xf32>, vector<8x8xf32> -> vector<8x8xf32>
    %cst_57 = arith.constant 0.176776692 : f32
    %105 = vector.broadcast %cst_57 : f32 to vector<8x8xf32>
    %106 = arith.mulf %104, %105 : vector<8x8xf32>
    %cst_58 = arith.constant dense<0xFF800000> : vector<8xf32>
    %107 = vector.multi_reduction <maximumf>, %106, %cst_58 [0] : vector<8x8xf32> to vector<8xf32>
    %108 = vector.shape_cast %107 : vector<8xf32> to vector<1x8xf32>
    %109 = vector.broadcast %108 : vector<1x8xf32> to vector<8x8xf32>
    %110 = arith.subf %106, %109 : vector<8x8xf32>
    %111 = math.exp %110 : vector<8x8xf32>
    %cst_59 = arith.constant dense<0.000000e+00> : vector<8xf32>
    %112 = vector.multi_reduction <add>, %111, %cst_59 [0] : vector<8x8xf32> to vector<8xf32>
    %113 = vector.shape_cast %112 : vector<8xf32> to vector<1x8xf32>
    %114 = tpu.reciprocal %113 : vector<1x8xf32> -> vector<1x8xf32>
    %115 = vector.broadcast %114 : vector<1x8xf32> to vector<8x8xf32>
    %116 = arith.mulf %111, %115 : vector<8x8xf32>
    %cst_60 = arith.constant dense<0.000000e+00> : vector<8x32xf32>
    %117 = tpu.matmul %116, %103, %cst_60 {dimension_numbers = #tpu.dot_dimension_numbers<[1], [0], [0], [1], [0, 0, 1, 1], [], []>} : vector<8x8xf32>, vector<8x32xf32>, vector<8x32xf32> -> vector<8x32xf32>
    %c1_61 = arith.constant 1 : index
    %c0_62 = arith.constant 0 : index
    %c0_63 = arith.constant 0 : index
    %118 = vector.load %arg7[%c1_61, %c0_62, %c0_63] : memref<2x8x128xf32, #tpu.memory_space<vmem>>, vector<1x8x32xf32>
    %119 = vector.shape_cast %118 : vector<1x8x32xf32> to vector<8x32xf32>
    %120 = vector.shape_cast %117 : vector<8x32xf32> to vector<1x8x32xf32>
    tpu.vector_store %arg7[%c1_61, %c0_62, %c0_63], %120 {strides = array<i32>} : memref<2x8x128xf32, #tpu.memory_space<vmem>>, vector<1x8x32xf32>,
    %121 = vector.extract_strided_slice %94 {offsets = [0, 32], sizes = [8, 32], strides = [1, 1]} : vector<8x128xf32> to vector<8x32xf32>
    %122 = vector.extract_strided_slice %97 {offsets = [0, 32], sizes = [8, 32], strides = [1, 1]} : vector<8x128xf32> to vector<8x32xf32>
    %123 = vector.extract_strided_slice %100 {offsets = [0, 32], sizes = [8, 32], strides = [1, 1]} : vector<8x128xf32> to vector<8x32xf32>
    %cst_64 = arith.constant dense<0.000000e+00> : vector<8x8xf32>
    %124 = tpu.matmul %121, %122, %cst_64 {dimension_numbers = #tpu.dot_dimension_numbers<[1], [1], [0], [0], [0, 0, 1, 0], [], []>} : vector<8x32xf32>, vector<8x32xf32>, vector<8x8xf32> -> vector<8x8xf32>
    %cst_65 = arith.constant 0.176776692 : f32
    %125 = vector.broadcast %cst_65 : f32 to vector<8x8xf32>
    %126 = arith.mulf %124, %125 : vector<8x8xf32>
    %cst_66 = arith.constant dense<0xFF800000> : vector<8xf32>
    %127 = vector.multi_reduction <maximumf>, %126, %cst_66 [0] : vector<8x8xf32> to vector<8xf32>
    %128 = vector.shape_cast %127 : vector<8xf32> to vector<1x8xf32>
    %129 = vector.broadcast %128 : vector<1x8xf32> to vector<8x8xf32>
    %130 = arith.subf %126, %129 : vector<8x8xf32>
    %131 = math.exp %130 : vector<8x8xf32>
    %cst_67 = arith.constant dense<0.000000e+00> : vector<8xf32>
    %132 = vector.multi_reduction <add>, %131, %cst_67 [0] : vector<8x8xf32> to vector<8xf32>
    %133 = vector.shape_cast %132 : vector<8xf32> to vector<1x8xf32>
    %134 = tpu.reciprocal %133 : vector<1x8xf32> -> vector<1x8xf32>
    %135 = vector.broadcast %134 : vector<1x8xf32> to vector<8x8xf32>
    %136 = arith.mulf %131, %135 : vector<8x8xf32>
    %cst_68 = arith.constant dense<0.000000e+00> : vector<8x32xf32>
    %137 = tpu.matmul %136, %123, %cst_68 {dimension_numbers = #tpu.dot_dimension_numbers<[1], [0], [0], [1], [0, 0, 1, 1], [], []>} : vector<8x8xf32>, vector<8x32xf32>, vector<8x32xf32> -> vector<8x32xf32>
    %c1_69 = arith.constant 1 : index
    %c0_70 = arith.constant 0 : index
    %c32_71 = arith.constant 32 : index
    %138 = vector.load %arg7[%c1_69, %c0_70, %c32_71] : memref<2x8x128xf32, #tpu.memory_space<vmem>>, vector<1x8x32xf32>
    %139 = vector.shape_cast %138 : vector<1x8x32xf32> to vector<8x32xf32>
    %140 = vector.shape_cast %137 : vector<8x32xf32> to vector<1x8x32xf32>
    tpu.vector_store %arg7[%c1_69, %c0_70, %c32_71], %140 {strides = array<i32>} : memref<2x8x128xf32, #tpu.memory_space<vmem>>, vector<1x8x32xf32>,
    %141 = vector.extract_strided_slice %94 {offsets = [0, 64], sizes = [8, 32], strides = [1, 1]} : vector<8x128xf32> to vector<8x32xf32>
    %142 = vector.extract_strided_slice %97 {offsets = [0, 64], sizes = [8, 32], strides = [1, 1]} : vector<8x128xf32> to vector<8x32xf32>
    %143 = vector.extract_strided_slice %100 {offsets = [0, 64], sizes = [8, 32], strides = [1, 1]} : vector<8x128xf32> to vector<8x32xf32>
    %cst_72 = arith.constant dense<0.000000e+00> : vector<8x8xf32>
    %144 = tpu.matmul %141, %142, %cst_72 {dimension_numbers = #tpu.dot_dimension_numbers<[1], [1], [0], [0], [0, 0, 1, 0], [], []>} : vector<8x32xf32>, vector<8x32xf32>, vector<8x8xf32> -> vector<8x8xf32>
    %cst_73 = arith.constant 0.176776692 : f32
    %145 = vector.broadcast %cst_73 : f32 to vector<8x8xf32>
    %146 = arith.mulf %144, %145 : vector<8x8xf32>
    %cst_74 = arith.constant dense<0xFF800000> : vector<8xf32>
    %147 = vector.multi_reduction <maximumf>, %146, %cst_74 [0] : vector<8x8xf32> to vector<8xf32>
    %148 = vector.shape_cast %147 : vector<8xf32> to vector<1x8xf32>
    %149 = vector.broadcast %148 : vector<1x8xf32> to vector<8x8xf32>
    %150 = arith.subf %146, %149 : vector<8x8xf32>
    %151 = math.exp %150 : vector<8x8xf32>
    %cst_75 = arith.constant dense<0.000000e+00> : vector<8xf32>
    %152 = vector.multi_reduction <add>, %151, %cst_75 [0] : vector<8x8xf32> to vector<8xf32>
    %153 = vector.shape_cast %152 : vector<8xf32> to vector<1x8xf32>
    %154 = tpu.reciprocal %153 : vector<1x8xf32> -> vector<1x8xf32>
    %155 = vector.broadcast %154 : vector<1x8xf32> to vector<8x8xf32>
    %156 = arith.mulf %151, %155 : vector<8x8xf32>
    %cst_76 = arith.constant dense<0.000000e+00> : vector<8x32xf32>
    %157 = tpu.matmul %156, %143, %cst_76 {dimension_numbers = #tpu.dot_dimension_numbers<[1], [0], [0], [1], [0, 0, 1, 1], [], []>} : vector<8x8xf32>, vector<8x32xf32>, vector<8x32xf32> -> vector<8x32xf32>
    %c1_77 = arith.constant 1 : index
    %c0_78 = arith.constant 0 : index
    %c64_79 = arith.constant 64 : index
    %158 = vector.load %arg7[%c1_77, %c0_78, %c64_79] : memref<2x8x128xf32, #tpu.memory_space<vmem>>, vector<1x8x32xf32>
    %159 = vector.shape_cast %158 : vector<1x8x32xf32> to vector<8x32xf32>
    %160 = vector.shape_cast %157 : vector<8x32xf32> to vector<1x8x32xf32>
    tpu.vector_store %arg7[%c1_77, %c0_78, %c64_79], %160 {strides = array<i32>} : memref<2x8x128xf32, #tpu.memory_space<vmem>>, vector<1x8x32xf32>,
    %161 = vector.extract_strided_slice %94 {offsets = [0, 96], sizes = [8, 32], strides = [1, 1]} : vector<8x128xf32> to vector<8x32xf32>
    %162 = vector.extract_strided_slice %97 {offsets = [0, 96], sizes = [8, 32], strides = [1, 1]} : vector<8x128xf32> to vector<8x32xf32>
    %163 = vector.extract_strided_slice %100 {offsets = [0, 96], sizes = [8, 32], strides = [1, 1]} : vector<8x128xf32> to vector<8x32xf32>
    %cst_80 = arith.constant dense<0.000000e+00> : vector<8x8xf32>
    %164 = tpu.matmul %161, %162, %cst_80 {dimension_numbers = #tpu.dot_dimension_numbers<[1], [1], [0], [0], [0, 0, 1, 0], [], []>} : vector<8x32xf32>, vector<8x32xf32>, vector<8x8xf32> -> vector<8x8xf32>
    %cst_81 = arith.constant 0.176776692 : f32
    %165 = vector.broadcast %cst_81 : f32 to vector<8x8xf32>
    %166 = arith.mulf %164, %165 : vector<8x8xf32>
    %cst_82 = arith.constant dense<0xFF800000> : vector<8xf32>
    %167 = vector.multi_reduction <maximumf>, %166, %cst_82 [0] : vector<8x8xf32> to vector<8xf32>
    %168 = vector.shape_cast %167 : vector<8xf32> to vector<1x8xf32>
    %169 = vector.broadcast %168 : vector<1x8xf32> to vector<8x8xf32>
    %170 = arith.subf %166, %169 : vector<8x8xf32>
    %171 = math.exp %170 : vector<8x8xf32>
    %cst_83 = arith.constant dense<0.000000e+00> : vector<8xf32>
    %172 = vector.multi_reduction <add>, %171, %cst_83 [0] : vector<8x8xf32> to vector<8xf32>
    %173 = vector.shape_cast %172 : vector<8xf32> to vector<1x8xf32>
    %174 = tpu.reciprocal %173 : vector<1x8xf32> -> vector<1x8xf32>
    %175 = vector.broadcast %174 : vector<1x8xf32> to vector<8x8xf32>
    %176 = arith.mulf %171, %175 : vector<8x8xf32>
    %cst_84 = arith.constant dense<0.000000e+00> : vector<8x32xf32>
    %177 = tpu.matmul %176, %163, %cst_84 {dimension_numbers = #tpu.dot_dimension_numbers<[1], [0], [0], [1], [0, 0, 1, 1], [], []>} : vector<8x8xf32>, vector<8x32xf32>, vector<8x32xf32> -> vector<8x32xf32>
    %c1_85 = arith.constant 1 : index
    %c0_86 = arith.constant 0 : index
    %c96_87 = arith.constant 96 : index
    %178 = vector.load %arg7[%c1_85, %c0_86, %c96_87] : memref<2x8x128xf32, #tpu.memory_space<vmem>>, vector<1x8x32xf32>
    %179 = vector.shape_cast %178 : vector<1x8x32xf32> to vector<8x32xf32>
    %180 = vector.shape_cast %177 : vector<8x32xf32> to vector<1x8x32xf32>
    tpu.vector_store %arg7[%c1_85, %c0_86, %c96_87], %180 {strides = array<i32>} : memref<2x8x128xf32, #tpu.memory_space<vmem>>, vector<1x8x32xf32>,
    return
  }
  func.func @transform_0(%arg0: i32) -> (i32, i32, i32) {
    %c0_i32 = arith.constant 0 : i32
    %c0_i32_0 = arith.constant 0 : i32
    %c0_i32_1 = arith.constant 0 : i32
    return %arg0, %c0_i32, %c0_i32_0 : i32, i32, i32
  }
  func.func @transform_1(%arg0: i32) -> (i32, i32, i32) {
    %c0_i32 = arith.constant 0 : i32
    %c0_i32_0 = arith.constant 0 : i32
    %c0_i32_1 = arith.constant 0 : i32
    return %arg0, %c0_i32, %c0_i32_0 : i32, i32, i32
  }
  func.func @transform_2(%arg0: i32) -> (i32, i32, i32) {
    %c0_i32 = arith.constant 0 : i32
    %c0_i32_0 = arith.constant 0 : i32
    %c0_i32_1 = arith.constant 0 : i32
    return %arg0, %c0_i32, %c0_i32_0 : i32, i32, i32
  }
  func.func @transform_3(%arg0: i32) -> (i32, i32) {
    %c0_i32 = arith.constant 0 : i32
    %c0_i32_0 = arith.constant 0 : i32
    %c0_i32_1 = arith.constant 0 : i32
    return %c0_i32, %c0_i32_0 : i32, i32
  }
  func.func @transform_4(%arg0: i32) -> (i32, i32) {
    %c0_i32 = arith.constant 0 : i32
    %c0_i32_0 = arith.constant 0 : i32
    %c0_i32_1 = arith.constant 0 : i32
    return %c0_i32, %c0_i32_0 : i32, i32
  }
  func.func @transform_5(%arg0: i32) -> (i32, i32) {
    %c0_i32 = arith.constant 0 : i32
    %c0_i32_0 = arith.constant 0 : i32
    %c0_i32_1 = arith.constant 0 : i32
    return %c0_i32, %c0_i32_0 : i32, i32
  }
  func.func @transform_6(%arg0: i32) -> (i32, i32, i32) {
    %c0_i32 = arith.constant 0 : i32
    %c0_i32_0 = arith.constant 0 : i32
    %c0_i32_1 = arith.constant 0 : i32
    return %arg0, %c0_i32, %c0_i32_0 : i32, i32, i32
  }
}

</mosaic_0001>

<bundles_post_ra>
// kernel: tpu_custom_call.1
= control target key start
LH: loop header
LB: loop body
LE: loop exit
PB: predicated region body
PF: predicated region fallthrough
CT: control target
= control target key end

     0   :  { %11 = vsyncpa [#allocation3], 0  ;;  %s1473_s0 = inlined_call_operand.hbm [shape: f32[2,8,32], index: 0, kind: input, shape index: {}]   ;;  %s1474_s1 = inlined_call_operand.hbm [shape: f32[2,8,32], index: 1, kind: input, shape index: {}]   ;;  %s1475_s2 = inlined_call_operand.hbm [shape: f32[2,8,32], index: 2, kind: input, shape index: {}]   ;;  %s1476_s3 = inlined_call_operand.hbm [shape: f32[32,128], index: 3, kind: input, shape index: {}]   ;;  %s1477_s4 = inlined_call_operand.hbm [shape: f32[32,128], index: 4, kind: input, shape index: {}]   ;;  %s1478_s5 = inlined_call_operand.hbm [shape: f32[32,128], index: 5, kind: input, shape index: {}]   ;;  %s1479_s6 = inlined_call_operand.hbm [shape: f32[2,8,128], index: 6, kind: output, shape index: {}]  }
   0x1   :  { %12 = vsyncpa [#allocation6], 0 }
   0x2   :  { %13 = vsyncpa [#allocation9], 0 }
   0x3   :  { %14 = vsyncpa [#allocation12], 0 }
   0x4   :  { %15 = vsyncpa [#allocation4], 0  ;;  %s33_s23 = sshll.u32 %s1474_s1, 4  ;;  %s1277_s24 = smov [#allocation5]   ;;  %s34_s23 = int_to_ptr.hbm [resolvable:$true] %s33_s23 }
   0x5   :  { %s35_s25 = sshll.u32 %s1277_s24, 4  ;;  %s59_s28 = sshll.u32 %s1476_s3, 4  ;;  %s36_s25 = int_to_ptr.vmem [resolvable:$true] %s35_s25  ;;  %s60_s28 = int_to_ptr.hbm [resolvable:$true] %s59_s28 }
   0x6   :  { %s1278_s29 = smov 128   ;;  %s1279_s30 = smov 8  }
   0x7   :  { %41 = dma.hbm_to_vmem [thread:$0]  %s34_s23, 256, %s36_s25, [#allocation6], %s1278_s29, %s1278_s29, %s1279_s30  }
   0x8   :  { %s1280_s7 = smov [#allocation8]   ;;  %s20_s1 = sshll.u32 %s1473_s0, 4  ;;  %s21_s1 = int_to_ptr.hbm [resolvable:$true] %s20_s1 }
   0x9   :  { %s61_s8 = sshll.u32 %s1280_s7, 4  ;;  %s46_s12 = sshll.u32 %s1475_s2, 4  ;;  %s62_s8 = int_to_ptr.vmem [resolvable:$true] %s61_s8  ;;  %s47_s12 = int_to_ptr.hbm [resolvable:$true] %s46_s12 }
   0xa   :  { %67 = dma.hbm_to_vmem [thread:$0]  %s60_s28, 512, %s62_s8, [#allocation9], %s1278_s29, %s1278_s29, %s1279_s30  }
   0xb   :  { %s1281_s13 = smov [#allocation2]   ;;  %s1282_s15 = smov [#allocation7]  }
   0xc   :  { %s22_s14 = sshll.u32 %s1281_s13, 4  ;;  %s48_s0 = sshll.u32 %s1282_s15, 4  ;;  %s23_s14 = int_to_ptr.vmem [resolvable:$true] %s22_s14  ;;  %s49_s0 = int_to_ptr.vmem [resolvable:$true] %s48_s0 }
   0xd   :  { %28 = dma.hbm_to_vmem [thread:$0]  %s21_s1, 256, %s23_s14, [#allocation3], %s1278_s29, %s1278_s29, %s1279_s30  }
   0xe   :  { %s72_s18 = sshll.u32 %s1477_s4, 4  ;;  %s85_s20 = sshll.u32 %s1478_s5, 4  ;;  %s73_s18 = int_to_ptr.hbm [resolvable:$true] %s72_s18  ;;  %s86_s20 = int_to_ptr.hbm [resolvable:$true] %s85_s20 }
   0xf   :  { %54 = dma.hbm_to_vmem [thread:$0]  %s47_s12, 256, %s49_s0, [#allocation6], %s1278_s29, %s1278_s29, %s1279_s30  }
  0x10   :  { %s1283_s21 = smov [#allocation10]   ;;  %s1284_s23 = smov [#allocation11]  }
  0x11   :  { %s74_s22 = sshll.u32 %s1283_s21, 4  ;;  %s87_s4 = sshll.u32 %s1284_s23, 4  ;;  %s75_s22 = int_to_ptr.vmem [resolvable:$true] %s74_s22  ;;  %s88_s4 = int_to_ptr.vmem [resolvable:$true] %s87_s4 }
  0x12   :  { %80 = dma.hbm_to_vmem [thread:$0]  %s73_s18, 512, %s75_s22, [#allocation9], %s1278_s29, %s1278_s29, %s1279_s30  }
  0x13   :  { %93 = dma.hbm_to_vmem [thread:$0]  %s86_s20, 512, %s88_s4, [#allocation12], %s1278_s29, %s1278_s29, %s1279_s30  }
  0x14   :  { %1267 = dma.done.wait [#allocation3], 256  }
  0x15   :  { %1268 = vsyncadd [#allocation3], 4294967040 }
  0x16   :  { %1269 = dma.done.wait [#allocation6], 512  }
  0x17   :  { %1270 = vsyncadd [#allocation6], 4294966784 }
  0x18   :  { %1271 = dma.done.wait [#allocation9], 1024  }
  0x19   :  { %1272 = vsyncadd [#allocation9], 4294966272 }
  0x1a   :  { %1273 = dma.done.wait [#allocation12], 512  }
  0x1b   :  { %1274 = vsyncadd [#allocation12], 4294966784  ;;  %v1360_v0 = vld [vmem:[#allocation10 + $0x18] sm:$0xff]  ;;  %v1362_v1 = vld [vmem:[#allocation10 + $0x10] sm:$0xff]  ;;  %vm131_vm0 = vcmask 261120   ;;  %s1285_s5 = smov 32  }
  0x1c   :  { %v121_v2 = vld [vmem:[#allocation8 + $0x18] sm:$0xff]  ;;  %171 = vmatpush.msra.mxu1 %v1360_v0  ;;  %v120_v3 = vld [vmem:[#allocation8 + $0x10] sm:$0xff]  ;;  %v1365_v4 = vld [vmem:[#allocation10 + $0x8] sm:$0xff]  ;;  %s1286_s24 = smov 96   ;;  %s1287_s25 = smov 64   ;;  %vm230_vm1 = vcmask 64512  }
  0x1d   :  { %147 = vmatpush.msra.mxu0 %v121_v2  ;;  %v119_v5 = vld [vmem:[#allocation8 + $0x8] sm:$0xff]  ;;  %v1368_v6 = vld [vmem:[#allocation10] sm:$0xff]  ;;  %v130_v9 = vld [vmem:[#allocation2] sm:$0xff]  ;;  %s1288_s26 = smov [#allocation13]   ;;  %s1009_s8 = sshll.u32 %s1479_s6, 4  ;;  %s1010_s8 = int_to_ptr.hbm [resolvable:$true] %s1009_s8 }
  0x1e   :  { %172 = vmatpush.msra.mxu1 %v1362_v1  ;;  %v118_v7 = vld [vmem:[#allocation8] sm:$0xff]  ;;  %v129_v10 = vld [vmem:[#allocation11 + $0x18] sm:$0xff]  ;;  %v128_v11 = vld [vmem:[#allocation11 + $0x10] sm:$0xff]  ;;  %s1007_s27 = sshll.u32 %s1288_s26, 4  ;;  %s1008_s27 = int_to_ptr.vmem [resolvable:$true] %s1007_s27 }
  0x1f   :  { %148 = vmatpush.msra.mxu0 %v120_v3  ;;  %v155_v8 = vld [vmem:[#allocation5] sm:$0xff]  ;;  %195 = vmatpush.msra.mxu2 %v129_v10  ;;  %v127_v12 = vld [vmem:[#allocation11 + $0x8] sm:$0xff]  ;;  %v179_v14 = vld [vmem:[#allocation7] sm:$0xff] }
  0x20   :  { %173 = vmatpush.msra.mxu1 %v1365_v4  ;;  %v126_v13 = vld [vmem:[#allocation11] sm:$0xff] }
  0x21   :  { %149 = vmatpush.msra.mxu0 %v119_v5  ;;  %196 = vmatpush.msra.mxu2 %v128_v11 }
  0x22   :  { %174 = vmatpush.msra.mxu1 %v1368_v6 }
  0x23   :  { %150 = vmatpush.msra.mxu0 %v118_v7  ;;  %1026 = vmatmul.msk.f32.vlgmr.msra.gmra.mxu1 %vm131_vm0, %v155_v8 }
  0x24   :  { %1025 = vmatmul.msk.f32.vlgmr.msra.gmra.mxu0 %vm131_vm0, %v130_v9  ;;  %197 = vmatpush.msra.mxu2 %v127_v12 }
  0x26   :  { %198 = vmatpush.msra.mxu2 %v126_v13 }
  0x27   :  { %1027 = vmatmul.msk.f32.vlgmr.msra.gmra.mxu2 %vm131_vm0, %v179_v14 }
  0xa0   :  { %v176_v15 = vpop.f32.mrf.mxu1 }
  0xa1   :  { %476 = vrot.lane.b32.xlu2 %v176_v15, %s1285_s5  ;;  %289 = vrot.lane.b32.xlu1 %v176_v15, %s1286_s24  ;;  %v152_v16 = vpop.f32.mrf.mxu0 }
  0xa2   :  { %383 = vrot.lane.b32.xlu0 %v176_v15, %s1287_s25  ;;  %1028 = vmatpush.xpose.msk.msra.mxu3 %vm131_vm0, %v176_v15 }
  0xa5   :  { %1029 = vmatmul.msk.f32.vlgmr.msra.gmra.mxu3 %vm131_vm0, %v152_v16 }
  0xa9   :  { %474 = vrot.lane.b32.xlu2 %v152_v16, %s1285_s5  ;;  %287 = vrot.lane.b32.xlu1 %v152_v16, %s1286_s24 }
  0xaa   :  { %381 = vrot.lane.b32.xlu0 %v152_v16, %s1287_s25  ;;  %v200_v27 = vpop.f32.mrf.mxu2 }
  0xab   :  { %281 = vmatpush.msrb.mxu3 %v200_v27 }
  0xb1   :  { %349 = vrot.lane.b32.xlu1 %v200_v27, %s1286_s24  ;;  %535 = vrot.lane.b32.xlu2 %v200_v27, %s1285_s5 }
  0xb2   :  { %442 = vrot.lane.b32.xlu0 %v200_v27, %s1287_s25 }
  0xfb   :  { %v477_v18 = vpop.permute.xlu2 %476 }
 0x103   :  { %v475_v22 = vpop.permute.xlu2 %474 }
 0x113   :  { %v290_v17 = vpop.permute.xlu1 %289 }
 0x114   :  { %v384_v19 = vpop.permute.xlu0 %383  ;;  %1031 = vmatpush.xpose.msk.msrb.mxu0 %vm131_vm0, %v290_v17 }
 0x115   :  { %1034 = vmatpush.xpose.msk.msrb.mxu2 %vm131_vm0, %v384_v19 }
 0x118   :  { %1037 = vmatpush.xpose.msk.msra.mxu0 %vm131_vm0, %v477_v18 }
 0x119   :  { %584 = vmatpush.msra.mxu2 %v121_v2  ;;  %v536_v2 = vpop.permute.xlu2 %535 }
 0x11b   :  { %585 = vmatpush.msra.mxu2 %v120_v3  ;;  %v288_v20 = vpop.permute.xlu1 %287 }
 0x11c   :  { %v382_v21 = vpop.permute.xlu0 %381  ;;  %1032 = vmatmul.msk.f32.vlgmr.msrb.gmra.mxu0 %vm131_vm0, %v288_v20 }
 0x11d   :  { %586 = vmatpush.msra.mxu2 %v119_v5  ;;  %634 = vmatpush.msrb.mxu0 %v129_v10 }
 0x11e   :  { %1035 = vmatmul.msk.f32.vlgmr.msrb.gmra.mxu2 %vm131_vm0, %v382_v21 }
 0x11f   :  { %587 = vmatpush.msra.mxu2 %v118_v7  ;;  %635 = vmatpush.msrb.mxu0 %v128_v11 }
 0x121   :  { %636 = vmatpush.msrb.mxu0 %v127_v12  ;;  %v568_v12 = vld [vmem:[#allocation2 + $0x8] sm:$0xff] }
 0x123   :  { %637 = vmatpush.msrb.mxu0 %v126_v13  ;;  %v350_v60 = vpop.permute.xlu1 %349 }
 0x124   :  { %1038 = vmatmul.msk.f32.vlgmr.msra.gmra.mxu0 %vm131_vm0, %v475_v22  ;;  %370 = vmatpush.msrb.mxu1 %v350_v60 }
 0x126   :  { %556 = vmatpush.msra.mxu1 %v536_v2  ;;  %1040 = vmatmul.msk.f32.vlgmr.msra.gmra.mxu2 %vm131_vm0, %v568_v12 }
 0x128   :  { %v226_v23 = vpop.f32.mrf.mxu3 }
 0x129   :  { %v229_v24 = vmul.f32 0.17677669, %v226_v23 }
 0x12b   :  { %v231_v25 = vsel %vm230_vm1, %v229_v24, -inf }
 0x12c   :  { %v232_v26 = vrot.slane %v231_v25, 4 }
 0x12e   :  { %v233_v28 = vmax.f32 %v231_v25, %v232_v26 }
 0x130   :  { %v234_v29 = vrot.slane %v233_v28, 2 }
 0x132   :  { %v235_v30 = vmax.f32 %v233_v28, %v234_v29 }
 0x134   :  { %v236_v31 = vrot.slane %v235_v30, 1 }
 0x136   :  { %v237_v32 = vmax.f32 %v235_v30, %v236_v31 }
 0x138   :  { %v238_v33 = vsub.f32 %v229_v24, %v237_v32 }
 0x13a   :  { %v239_v34 = vmul.f32 1.442695, %v238_v33 }
 0x13c   :  { %1067 = vpow2.f32 %v239_v34 }
 0x142   :  { %v1068_v35 = vpop.eup %1067 }
 0x143   :  { %v241_v36 = vsel %vm230_vm1, %v1068_v35, 0.0 }
 0x144   :  { %v242_v37 = vrot.slane %v241_v36, 4 }
 0x146   :  { %v243_v38 = vadd.f32 %v242_v37, %v241_v36  ;;  %v443_v36 = vpop.permute.xlu0 %442 }
 0x147   :  { %463 = vmatpush.msra.mxu3 %v443_v36 }
 0x148   :  { %v244_v39 = vrot.slane %v243_v38, 2 }
 0x14a   :  { %v245_v40 = vadd.f32 %v244_v39, %v243_v38 }
 0x14c   :  { %v246_v41 = vrot.slane %v245_v40, 1 }
 0x14e   :  { %v247_v42 = vadd.f32 %v246_v41, %v245_v40 }
 0x150   :  { %1069 = vrcp.f32 %v247_v42  ;;  %v259_v46 = vand.u32 2147483648, %v247_v42  ;;  %v257_v48 = vand.u32 2147483647, %v247_v42  ;;  %vm253_vm3 = vweird.f32 %v247_v42 }
 0x152   :  { %v260_v50 = vor.u32 1.1754944e-38, %v259_v46  ;;  %vm258_vm5 = vcmp.eq.f32.partialorder %v257_v48, 8.507059e+37 }
 0x156   :  { %v1070_v43 = vpop.eup %1069 }
 0x157   :  { %v249_v44 = vmul.f32 %v1070_v43, %v247_v42  ;;  %vm254_vm2 = vweird.f32 %v1070_v43 }
 0x158   :  { %vm255_vm4 = vmor %vm253_vm3, %vm254_vm2 }
 0x159   :  { %v250_v45 = vsub.f32 1.0, %v249_v44 }
 0x15b   :  { %v251_v47 = vmul.f32 %v1070_v43, %v250_v45 }
 0x15d   :  { %v252_v49 = vadd.f32 %v1070_v43, %v251_v47 }
 0x15f   :  { %v256_v51 = vsel %vm255_vm4, %v1070_v43, %v252_v49  ;;  %vm379_vm4 = vcmask 523520  }
 0x160   :  { %v261_v52 = vsel %vm258_vm5, %v260_v50, %v256_v51  ;;  %vm472_vm5 = vcmask 785920  }
 0x161   :  { %v262_v53 = vmul.f32 %v1068_v35, %v261_v52 }
 0x163   :  { %1030 = vmatmul.msk.f32.vlgmr.msrb.gmra.mxu3 %vm230_vm1, %v262_v53 }
 0x164   :  { %609 = vmatpush.msrb.mxu3 %v1360_v0 }
 0x166   :  { %610 = vmatpush.msrb.mxu3 %v1362_v1 }
 0x168   :  { %611 = vmatpush.msrb.mxu3 %v1365_v4 }
 0x16a   :  { %612 = vmatpush.msrb.mxu3 %v1368_v6 }
 0x199   :  { %v312_v54 = vpop.f32.mrf.mxu0 }
 0x19a   :  { %v315_v55 = vmul.f32 0.17677669, %v312_v54 }
 0x19c   :  { %v316_v56 = vsel %vm230_vm1, %v315_v55, -inf }
 0x19d   :  { %v317_v57 = vrot.slane %v316_v56, 4 }
 0x19f   :  { %v318_v58 = vmax.f32 %v316_v56, %v317_v57 }
 0x1a1   :  { %v406_v59 = vpop.f32.mrf.mxu2  ;;  %v319_v61 = vrot.slane %v318_v58, 2  ;;  %v499_v63 = vpop.f32.mrf.mxu0 }
 0x1a2   :  { %v409_v62 = vmul.f32 0.17677669, %v406_v59  ;;  %v502_v3 = vmul.f32 0.17677669, %v499_v63 }
 0x1a3   :  { %v320_v5 = vmax.f32 %v318_v58, %v319_v61 }
 0x1a4   :  { %v410_v7 = vsel %vm230_vm1, %v409_v62, -inf  ;;  %v503_v9 = vsel %vm230_vm1, %v502_v3, -inf }
 0x1a5   :  { %v411_v8 = vrot.slane %v410_v7, 4  ;;  %v321_v10 = vrot.slane %v320_v5, 1  ;;  %v504_v11 = vrot.slane %v503_v9, 4 }
 0x1a7   :  { %v412_v13 = vmax.f32 %v410_v7, %v411_v8  ;;  %v322_v14 = vmax.f32 %v320_v5, %v321_v10  ;;  %v505_v15 = vmax.f32 %v503_v9, %v504_v11 }
 0x1a9   :  { %v413_v16 = vrot.slane %v412_v13, 2  ;;  %v323_v17 = vsub.f32 %v315_v55, %v322_v14  ;;  %v506_v18 = vrot.slane %v505_v15, 2  ;;  %v618_v55 = vld [vmem:[#allocation7 + $0x8] sm:$0xff] }
 0x1aa   :  { %1042 = vmatmul.msk.f32.vlgmr.msrb.gmra.mxu0 %vm131_vm0, %v618_v55 }
 0x1ab   :  { %v414_v19 = vmax.f32 %v412_v13, %v413_v16  ;;  %v324_v20 = vmul.f32 1.442695, %v323_v17  ;;  %v507_v21 = vmax.f32 %v505_v15, %v506_v18 }
 0x1ad   :  { %v415_v22 = vrot.slane %v414_v19, 1  ;;  %1071 = vpow2.f32 %v324_v20  ;;  %v508_v23 = vrot.slane %v507_v21, 1 }
 0x1af   :  { %v416_v24 = vmax.f32 %v414_v19, %v415_v22  ;;  %v509_v25 = vmax.f32 %v507_v21, %v508_v23 }
 0x1b1   :  { %v417_v26 = vsub.f32 %v409_v62, %v416_v24  ;;  %v510_v27 = vsub.f32 %v502_v3, %v509_v25  ;;  %v593_v25 = vld [vmem:[#allocation5 + $0x8] sm:$0xff] }
 0x1b3   :  { %v418_v28 = vmul.f32 1.442695, %v417_v26  ;;  %v1399_v29 = vpop.eup %1071  ;;  %v511_v30 = vmul.f32 1.442695, %v510_v27  ;;  %v589_v27 = vpop.f32.mrf.mxu2 }
 0x1b4   :  { %v326_v31 = vsel %vm230_vm1, %v1399_v29, 0.0  ;;  %726 = vrot.lane.b32.xlu1 %v589_v27, %s1286_s24 }
 0x1b5   :  { %1073 = vpow2.f32 %v418_v28  ;;  %v327_v32 = vrot.slane %v326_v31, 4 }
 0x1b6   :  { %1075 = vpow2.f32 %v511_v30 }
 0x1b7   :  { %v328_v33 = vadd.f32 %v327_v32, %v326_v31 }
 0x1b9   :  { %v329_v34 = vrot.slane %v328_v33, 2 }
 0x1bb   :  { %v1403_v35 = vpop.eup %1073  ;;  %v330_v38 = vadd.f32 %v329_v34, %v328_v33 }
 0x1bc   :  { %v1405_v37 = vpop.eup %1075  ;;  %v420_v39 = vsel %vm230_vm1, %v1403_v35, 0.0  ;;  %819 = vrot.lane.b32.xlu1 %v589_v27, %s1287_s25 }
 0x1bd   :  { %v421_v40 = vrot.slane %v420_v39, 4  ;;  %v513_v41 = vsel %vm230_vm1, %v1405_v37, 0.0  ;;  %v331_v42 = vrot.slane %v330_v38, 1 }
 0x1be   :  { %v514_v43 = vrot.slane %v513_v41, 4 }
 0x1bf   :  { %v422_v44 = vadd.f32 %v421_v40, %v420_v39  ;;  %v332_v45 = vadd.f32 %v331_v42, %v330_v38 }
 0x1c0   :  { %v515_v46 = vadd.f32 %v514_v43, %v513_v41 }
 0x1c1   :  { %v423_v47 = vrot.slane %v422_v44, 2  ;;  %1077 = vrcp.f32 %v332_v45  ;;  %v342_v57 = vand.u32 2147483647, %v332_v45  ;;  %v344_v4 = vand.u32 2147483648, %v332_v45 }
 0x1c2   :  { %v516_v48 = vrot.slane %v515_v46, 2  ;;  %vm338_vm7 = vweird.f32 %v332_v45 }
 0x1c3   :  { %v424_v49 = vadd.f32 %v423_v47, %v422_v44  ;;  %vm343_vm9 = vcmp.eq.f32.partialorder %v342_v57, 8.507059e+37  ;;  %v345_v2 = vor.u32 1.1754944e-38, %v344_v4 }
 0x1c4   :  { %v517_v50 = vadd.f32 %v516_v48, %v515_v46 }
 0x1c5   :  { %v425_v51 = vrot.slane %v424_v49, 1 }
 0x1c6   :  { %v518_v52 = vrot.slane %v517_v50, 1 }
 0x1c7   :  { %v426_v53 = vadd.f32 %v425_v51, %v424_v49  ;;  %v1078_v0 = vpop.eup %1077 }
 0x1c8   :  { %v519_v54 = vadd.f32 %v518_v52, %v517_v50  ;;  %v334_v1 = vmul.f32 %v1078_v0, %v332_v45  ;;  %vm339_vm6 = vweird.f32 %v1078_v0 }
 0x1c9   :  { %1079 = vrcp.f32 %v426_v53  ;;  %vm340_vm8 = vmor %vm338_vm7, %vm339_vm6  ;;  %v436_v3 = vand.u32 2147483647, %v426_v53  ;;  %v438_v5 = vand.u32 2147483648, %v426_v53  ;;  %vm432_vm12 = vweird.f32 %v426_v53 }
 0x1ca   :  { %1081 = vrcp.f32 %v519_v54  ;;  %v335_v56 = vsub.f32 1.0, %v334_v1  ;;  %v531_v10 = vand.u32 2147483648, %v519_v54  ;;  %v529_v13 = vand.u32 2147483647, %v519_v54 }
 0x1cb   :  { %v439_v16 = vor.u32 1.1754944e-38, %v438_v5  ;;  %vm525_vm14 = vweird.f32 %v519_v54  ;;  %vm437_vm15 = vcmp.eq.f32.partialorder %v436_v3, 8.507059e+37 }
 0x1cc   :  { %v336_v59 = vmul.f32 %v1078_v0, %v335_v56  ;;  %v532_v19 = vor.u32 1.1754944e-38, %v531_v10  ;;  %vm530_vm3 = vcmp.eq.f32.partialorder %v529_v13, 8.507059e+37 }
 0x1ce   :  { %v337_v62 = vadd.f32 %v1078_v0, %v336_v59 }
 0x1cf   :  { %v1080_v58 = vpop.eup %1079 }
 0x1d0   :  { %v1082_v60 = vpop.eup %1081  ;;  %v428_v6 = vmul.f32 %v1080_v58, %v426_v53  ;;  %v341_v8 = vsel %vm340_vm8, %v1078_v0, %v337_v62  ;;  %vm433_vm10 = vweird.f32 %v1080_v58 }
 0x1d1   :  { %v521_v61 = vmul.f32 %v1082_v60, %v519_v54  ;;  %v346_v11 = vsel %vm343_vm9, %v345_v2, %v341_v8  ;;  %vm526_vm11 = vweird.f32 %v1082_v60  ;;  %vm434_vm13 = vmor %vm432_vm12, %vm433_vm10 }
 0x1d2   :  { %v429_v63 = vsub.f32 1.0, %v428_v6  ;;  %v347_v14 = vmul.f32 %v1399_v29, %v346_v11  ;;  %vm527_vm2 = vmor %vm525_vm14, %vm526_vm11 }
 0x1d3   :  { %v522_v7 = vsub.f32 1.0, %v521_v61 }
 0x1d4   :  { %v430_v9 = vmul.f32 %v1080_v58, %v429_v63  ;;  %1033 = vmatmul.msk.f32.vlgmr.msrb.gmra.mxu1 %vm230_vm1, %v347_v14 }
 0x1d5   :  { %v523_v12 = vmul.f32 %v1082_v60, %v522_v7 }
 0x1d6   :  { %v431_v15 = vadd.f32 %v1080_v58, %v430_v9 }
 0x1d7   :  { %v524_v17 = vadd.f32 %v1082_v60, %v523_v12 }
 0x1d8   :  { %v435_v18 = vsel %vm434_vm13, %v1080_v58, %v431_v15 }
 0x1d9   :  { %v440_v20 = vsel %vm437_vm15, %v439_v16, %v435_v18  ;;  %v528_v21 = vsel %vm527_vm2, %v1082_v60, %v524_v17 }
 0x1da   :  { %v441_v22 = vmul.f32 %v1403_v35, %v440_v20  ;;  %v533_v23 = vsel %vm530_vm3, %v532_v19, %v528_v21 }
 0x1db   :  { %v534_v24 = vmul.f32 %v1405_v37, %v533_v23 }
 0x1dc   :  { %1036 = vmatmul.msk.f32.vlgmr.msra.gmra.mxu3 %vm230_vm1, %v441_v22 }
 0x1dd   :  { %1039 = vmatmul.msk.f32.vlgmr.msra.gmra.mxu1 %vm230_vm1, %v534_v24 }
 0x1e4   :  { %1041 = vmatmul.msk.f32.vlgmr.msrb.gmra.mxu3 %vm131_vm0, %v593_v25 }
 0x1e6   :  { %v283_v26 = vpop.f32.mrf.mxu3 }
 0x1e7   :  { %286 = vst.msk [vmem:[#allocation13] sm:$0xff] %vm131_vm0, %v283_v26 }
 0x226   :  { %v727_v32 = vpop.permute.xlu1 %726 }
 0x227   :  { %v639_v28 = vpop.f32.mrf.mxu0 }
 0x228   :  { %880 = vrot.lane.b32.xlu1 %v639_v28, %s1287_s25  ;;  %719 = vmatpush.msrb.mxu2 %v639_v28 }
 0x22e   :  { %v820_v34 = vpop.permute.xlu1 %819 }
 0x251   :  { %v372_v31 = vpop.f32.mrf.mxu1 }
 0x25a   :  { %v1441_v37 = vpop.f32.mrf.mxu1 }
 0x25f   :  { %v465_v29 = vpop.f32.mrf.mxu3 }
 0x267   :  { %v614_v30 = vpop.f32.mrf.mxu3 }
 0x268   :  { %821 = vrot.lane.b32.xlu2 %v614_v30, %s1287_s25  ;;  %728 = vrot.lane.b32.xlu0 %v614_v30, %s1286_s24 }
 0x269   :  { %1043 = vmatpush.xpose.msk.msrb.mxu1 %vm131_vm0, %v614_v30 }
 0x26c   :  { %1044 = vmatmul.msk.f32.vlgmr.msrb.gmra.mxu1 %vm131_vm0, %v589_v27 }
 0x270   :  { %911 = vrot.lane.b32.xlu2 %v589_v27, %s1285_s5  ;;  %913 = vrot.lane.b32.xlu0 %v614_v30, %s1285_s5 }
 0x278   :  { %972 = vrot.lane.b32.xlu2 %v639_v28, %s1285_s5  ;;  %788 = vrot.lane.b32.xlu0 %v639_v28, %s1286_s24 }
 0x280   :  { %469 = vrot.lane.b32.xlu2 %v465_v29, %s1287_s25  ;;  %376 = vrot.lane.b32.xlu0 %v372_v31, %s1285_s5 }
 0x29a   :  { %v881_v21 = vpop.permute.xlu1 %880 }
 0x29b   :  { %901 = vmatpush.msra.mxu2 %v881_v21 }
 0x2c2   :  { %v822_v33 = vpop.permute.xlu2 %821 }
 0x2c3   :  { %1049 = vmatpush.xpose.msk.msra.mxu1 %vm131_vm0, %v822_v33 }
 0x2c6   :  { %1050 = vmatmul.msk.f32.vlgmr.msra.gmra.mxu1 %vm131_vm0, %v820_v34 }
 0x2ca   :  { %v912_v36 = vpop.permute.xlu2 %911 }
 0x2d2   :  { %v973_v39 = vpop.permute.xlu2 %972 }
 0x2da   :  { %v729_v35 = vpop.permute.xlu0 %728  ;;  %v470_v48 = vpop.permute.xlu2 %469 }
 0x2db   :  { %1046 = vmatpush.xpose.msk.msra.mxu3 %vm131_vm0, %v729_v35 }
 0x2de   :  { %1047 = vmatmul.msk.f32.vlgmr.msra.gmra.mxu3 %vm131_vm0, %v727_v32 }
 0x2e2   :  { %v914_v38 = vpop.permute.xlu0 %913 }
 0x2e3   :  { %1052 = vmatpush.xpose.msk.msrb.mxu3 %vm131_vm0, %v914_v38 }
 0x2e6   :  { %1053 = vmatmul.msk.f32.vlgmr.msrb.gmra.mxu3 %vm131_vm0, %v912_v36 }
 0x2e9   :  { %v665_v40 = vpop.f32.mrf.mxu1 }
 0x2ea   :  { %v668_v41 = vmul.f32 0.17677669, %v665_v40  ;;  %v789_v42 = vpop.permute.xlu0 %788 }
 0x2eb   :  { %809 = vmatpush.msra.mxu0 %v789_v42 }
 0x2ec   :  { %v669_v43 = vsel %vm230_vm1, %v668_v41, -inf }
 0x2ed   :  { %993 = vmatpush.msrb.mxu0 %v973_v39  ;;  %v670_v44 = vrot.slane %v669_v43, 4 }
 0x2ef   :  { %v671_v45 = vmax.f32 %v669_v43, %v670_v44 }
 0x2f1   :  { %v672_v46 = vrot.slane %v671_v45, 2 }
 0x2f2   :  { %v377_v47 = vpop.permute.xlu0 %376 }
 0x2f3   :  { %v673_v49 = vmax.f32 %v671_v45, %v672_v46  ;;  %380 = vst.msk [vmem:[#allocation13] sm:$0xff] %vm379_vm4, %v377_v47 }
 0x2f4   :  { %473 = vst.msk [vmem:[#allocation13] sm:$0xff] %vm472_vm5, %v470_v48 }
 0x2f5   :  { %v674_v50 = vrot.slane %v673_v49, 1 }
 0x2f7   :  { %v675_v51 = vmax.f32 %v673_v49, %v674_v50 }
 0x2f9   :  { %v676_v52 = vsub.f32 %v668_v41, %v675_v51 }
 0x2fb   :  { %v677_v53 = vmul.f32 1.442695, %v676_v52 }
 0x2fd   :  { %1083 = vpow2.f32 %v677_v53 }
 0x303   :  { %v1084_v0 = vpop.eup %1083 }
 0x304   :  { %v679_v54 = vsel %vm230_vm1, %v1084_v0, 0.0 }
 0x305   :  { %v680_v55 = vrot.slane %v679_v54, 4 }
 0x307   :  { %v681_v1 = vadd.f32 %v680_v55, %v679_v54 }
 0x309   :  { %v682_v56 = vrot.slane %v681_v1, 2 }
 0x30b   :  { %v683_v57 = vadd.f32 %v682_v56, %v681_v1 }
 0x30d   :  { %v684_v4 = vrot.slane %v683_v57, 1 }
 0x30f   :  { %v685_v58 = vadd.f32 %v684_v4, %v683_v57 }
 0x311   :  { %1085 = vrcp.f32 %v685_v58  ;;  %v697_v61 = vand.u32 2147483648, %v685_v58  ;;  %v695_v63 = vand.u32 2147483647, %v685_v58  ;;  %vm691_vm7 = vweird.f32 %v685_v58 }
 0x313   :  { %v698_v3 = vor.u32 1.1754944e-38, %v697_v61  ;;  %vm696_vm9 = vcmp.eq.f32.partialorder %v695_v63, 8.507059e+37 }
 0x317   :  { %v1086_v59 = vpop.eup %1085 }
 0x318   :  { %v687_v60 = vmul.f32 %v1086_v59, %v685_v58  ;;  %vm692_vm6 = vweird.f32 %v1086_v59 }
 0x319   :  { %vm693_vm8 = vmor %vm691_vm7, %vm692_vm6 }
 0x31a   :  { %v688_v6 = vsub.f32 1.0, %v687_v60 }
 0x31c   :  { %v689_v62 = vmul.f32 %v1086_v59, %v688_v6 }
 0x31e   :  { %v690_v2 = vadd.f32 %v1086_v59, %v689_v62 }
 0x320   :  { %v694_v5 = vsel %vm693_vm8, %v1086_v59, %v690_v2 }
 0x321   :  { %v699_v7 = vsel %vm696_vm9, %v698_v3, %v694_v5 }
 0x322   :  { %v700_v8 = vmul.f32 %v1084_v0, %v699_v7 }
 0x324   :  { %1045 = vmatmul.msk.f32.vlgmr.msrb.gmra.mxu2 %vm230_vm1, %v700_v8 }
 0x343   :  { %v844_v9 = vpop.f32.mrf.mxu1 }
 0x344   :  { %v847_v10 = vmul.f32 0.17677669, %v844_v9 }
 0x346   :  { %v848_v11 = vsel %vm230_vm1, %v847_v10, -inf }
 0x347   :  { %v849_v12 = vrot.slane %v848_v11, 4 }
 0x349   :  { %v850_v13 = vmax.f32 %v848_v11, %v849_v12 }
 0x34b   :  { %v851_v14 = vrot.slane %v850_v13, 2 }
 0x34d   :  { %v852_v15 = vmax.f32 %v850_v13, %v851_v14 }
 0x34f   :  { %v853_v16 = vrot.slane %v852_v15, 1 }
 0x351   :  { %v854_v17 = vmax.f32 %v852_v15, %v853_v16 }
 0x353   :  { %v855_v18 = vsub.f32 %v847_v10, %v854_v17 }
 0x355   :  { %v856_v19 = vmul.f32 1.442695, %v855_v18 }
 0x357   :  { %1087 = vpow2.f32 %v856_v19 }
 0x35d   :  { %v1088_v20 = vpop.eup %1087 }
 0x35e   :  { %v858_v22 = vsel %vm230_vm1, %v1088_v20, 0.0 }
 0x35f   :  { %v859_v23 = vrot.slane %v858_v22, 4 }
 0x361   :  { %v860_v24 = vadd.f32 %v859_v23, %v858_v22  ;;  %v751_v25 = vpop.f32.mrf.mxu3 }
 0x362   :  { %v754_v26 = vmul.f32 0.17677669, %v751_v25 }
 0x363   :  { %v861_v27 = vrot.slane %v860_v24, 2 }
 0x364   :  { %v755_v28 = vsel %vm230_vm1, %v754_v26, -inf }
 0x365   :  { %v862_v29 = vadd.f32 %v861_v27, %v860_v24  ;;  %v756_v30 = vrot.slane %v755_v28, 4 }
 0x367   :  { %v863_v31 = vrot.slane %v862_v29, 1  ;;  %v757_v32 = vmax.f32 %v755_v28, %v756_v30 }
 0x369   :  { %v864_v33 = vadd.f32 %v863_v31, %v862_v29  ;;  %v758_v34 = vrot.slane %v757_v32, 2  ;;  %v936_v35 = vpop.f32.mrf.mxu3 }
 0x36a   :  { %v939_v36 = vmul.f32 0.17677669, %v936_v35 }
 0x36b   :  { %1089 = vrcp.f32 %v864_v33  ;;  %v759_v38 = vmax.f32 %v757_v32, %v758_v34  ;;  %v876_v51 = vand.u32 2147483648, %v864_v33  ;;  %v874_v0 = vand.u32 2147483647, %v864_v33 }
 0x36c   :  { %v940_v39 = vsel %vm230_vm1, %v939_v36, -inf  ;;  %vm870_vm11 = vweird.f32 %v864_v33 }
 0x36d   :  { %v941_v40 = vrot.slane %v940_v39, 4  ;;  %v760_v41 = vrot.slane %v759_v38, 1  ;;  %v877_v1 = vor.u32 1.1754944e-38, %v876_v51  ;;  %vm875_vm13 = vcmp.eq.f32.partialorder %v874_v0, 8.507059e+37 }
 0x36f   :  { %v942_v42 = vmax.f32 %v940_v39, %v941_v40  ;;  %v761_v43 = vmax.f32 %v759_v38, %v760_v41 }
 0x371   :  { %v1090_v44 = vpop.eup %1089  ;;  %v943_v45 = vrot.slane %v942_v42, 2  ;;  %v762_v47 = vsub.f32 %v754_v26, %v761_v43 }
 0x372   :  { %v866_v46 = vmul.f32 %v1090_v44, %v864_v33  ;;  %vm871_vm10 = vweird.f32 %v1090_v44 }
 0x373   :  { %v944_v48 = vmax.f32 %v942_v42, %v943_v45  ;;  %v763_v50 = vmul.f32 1.442695, %v762_v47  ;;  %vm872_vm12 = vmor %vm870_vm11, %vm871_vm10  ;;  %vm565_vm10 = vcmask 1048320  }
 0x374   :  { %v867_v49 = vsub.f32 1.0, %v866_v46 }
 0x375   :  { %v945_v52 = vrot.slane %v944_v48, 1  ;;  %1091 = vpow2.f32 %v763_v50 }
 0x376   :  { %v868_v53 = vmul.f32 %v1090_v44, %v867_v49 }
 0x377   :  { %v946_v54 = vmax.f32 %v944_v48, %v945_v52 }
 0x378   :  { %v869_v55 = vadd.f32 %v1090_v44, %v868_v53 }
 0x379   :  { %v947_v56 = vsub.f32 %v939_v36, %v946_v54 }
 0x37a   :  { %v873_v57 = vsel %vm872_vm12, %v1090_v44, %v869_v55 }
 0x37b   :  { %v878_v4 = vsel %vm875_vm13, %v877_v1, %v873_v57  ;;  %v948_v58 = vmul.f32 1.442695, %v947_v56  ;;  %v1092_v59 = vpop.eup %1091 }
 0x37c   :  { %v879_v60 = vmul.f32 %v1088_v20, %v878_v4  ;;  %v765_v6 = vsel %vm230_vm1, %v1092_v59, 0.0 }
 0x37d   :  { %1093 = vpow2.f32 %v948_v58  ;;  %v766_v61 = vrot.slane %v765_v6, 4 }
 0x37e   :  { %1051 = vmatmul.msk.f32.vlgmr.msra.gmra.mxu2 %vm230_vm1, %v879_v60 }
 0x37f   :  { %v767_v62 = vadd.f32 %v766_v61, %v765_v6 }
 0x381   :  { %v768_v63 = vrot.slane %v767_v62, 2 }
 0x383   :  { %v1094_v2 = vpop.eup %1093  ;;  %v769_v3 = vadd.f32 %v768_v63, %v767_v62 }
 0x384   :  { %v950_v5 = vsel %vm230_vm1, %v1094_v2, 0.0 }
 0x385   :  { %v951_v7 = vrot.slane %v950_v5, 4  ;;  %v770_v8 = vrot.slane %v769_v3, 1 }
 0x387   :  { %v952_v9 = vadd.f32 %v951_v7, %v950_v5  ;;  %v771_v10 = vadd.f32 %v770_v8, %v769_v3 }
 0x389   :  { %v953_v11 = vrot.slane %v952_v9, 2  ;;  %1095 = vrcp.f32 %v771_v10  ;;  %v783_v18 = vand.u32 2147483648, %v771_v10  ;;  %v781_v20 = vand.u32 2147483647, %v771_v10 }
 0x38a   :  { %vm777_vm15 = vweird.f32 %v771_v10 }
 0x38b   :  { %v954_v12 = vadd.f32 %v953_v11, %v952_v9  ;;  %v784_v23 = vor.u32 1.1754944e-38, %v783_v18  ;;  %vm782_vm3 = vcmp.eq.f32.partialorder %v781_v20, 8.507059e+37 }
 0x38d   :  { %v955_v13 = vrot.slane %v954_v12, 1 }
 0x38f   :  { %v956_v14 = vadd.f32 %v955_v13, %v954_v12  ;;  %v1096_v15 = vpop.eup %1095 }
 0x390   :  { %v773_v16 = vmul.f32 %v1096_v15, %v771_v10  ;;  %vm778_vm14 = vweird.f32 %v1096_v15 }
 0x391   :  { %1097 = vrcp.f32 %v956_v14  ;;  %vm779_vm2 = vmor %vm777_vm15, %vm778_vm14  ;;  %v968_v29 = vand.u32 2147483648, %v956_v14  ;;  %v966_v31 = vand.u32 2147483647, %v956_v14  ;;  %vm962_vm7 = vweird.f32 %v956_v14 }
 0x392   :  { %v774_v17 = vsub.f32 1.0, %v773_v16 }
 0x393   :  { %v969_v33 = vor.u32 1.1754944e-38, %v968_v29  ;;  %vm967_vm9 = vcmp.eq.f32.partialorder %v966_v31, 8.507059e+37 }
 0x394   :  { %v775_v19 = vmul.f32 %v1096_v15, %v774_v17 }
 0x396   :  { %v776_v22 = vadd.f32 %v1096_v15, %v775_v19 }
 0x397   :  { %v1098_v21 = vpop.eup %1097 }
 0x398   :  { %v958_v24 = vmul.f32 %v1098_v21, %v956_v14  ;;  %v780_v25 = vsel %vm779_vm2, %v1096_v15, %v776_v22  ;;  %vm963_vm6 = vweird.f32 %v1098_v21 }
 0x399   :  { %v785_v26 = vsel %vm782_vm3, %v784_v23, %v780_v25  ;;  %vm964_vm8 = vmor %vm962_vm7, %vm963_vm6 }
 0x39a   :  { %v959_v27 = vsub.f32 1.0, %v958_v24  ;;  %v786_v28 = vmul.f32 %v1092_v59, %v785_v26 }
 0x39c   :  { %v960_v30 = vmul.f32 %v1098_v21, %v959_v27  ;;  %1048 = vmatmul.msk.f32.vlgmr.msra.gmra.mxu0 %vm230_vm1, %v786_v28 }
 0x39e   :  { %v961_v32 = vadd.f32 %v1098_v21, %v960_v30 }
 0x3a0   :  { %v965_v34 = vsel %vm964_vm8, %v1098_v21, %v961_v32 }
 0x3a1   :  { %v970_v35 = vsel %vm967_vm9, %v969_v33, %v965_v34 }
 0x3a2   :  { %v971_v36 = vmul.f32 %v1094_v2, %v970_v35 }
 0x3a4   :  { %1054 = vmatmul.msk.f32.vlgmr.msrb.gmra.mxu0 %vm230_vm1, %v971_v36 }
 0x3a7   :  { %v721_v38 = vpop.f32.mrf.mxu2 }
 0x3a8   :  { %725 = vst.msk [vmem:[#allocation13 + $0x8] sm:$0xff] %vm131_vm0, %v721_v38 }
 0x401   :  { %v903_v39 = vpop.f32.mrf.mxu2 }
 0x402   :  { %907 = vrot.lane.b32.xlu0 %v903_v39, %s1287_s25 }
 0x419   :  { %v811_v40 = vpop.f32.mrf.mxu0 }
 0x41a   :  { %815 = vrot.lane.b32.xlu1 %v811_v40, %s1285_s5 }
 0x421   :  { %v995_v41 = vpop.f32.mrf.mxu0 }
 0x422   :  { %562 = vrot.lane.b32.xlu1 %v1441_v37, %s1286_s24  ;;  %999 = vrot.lane.b32.xlu2 %v995_v41, %s1286_s24 }
 0x474   :  { %v908_v43 = vpop.permute.xlu0 %907 }
 0x47c   :  { %v1000_v44 = vpop.permute.xlu2 %999 }
 0x48c   :  { %v816_v42 = vpop.permute.xlu1 %815 }
 0x48d   :  { %818 = vst.msk [vmem:[#allocation13 + $0x8] sm:$0xff] %vm379_vm4, %v816_v42 }
 0x48e   :  { %910 = vst.msk [vmem:[#allocation13 + $0x8] sm:$0xff] %vm472_vm5, %v908_v43 }
 0x48f   :  { %1002 = vst.msk [vmem:[#allocation13 + $0x8] sm:$0xff] %vm565_vm10, %v1000_v44 }
 0x494   :  { %v563_v37 = vpop.permute.xlu1 %562 }
 0x495   :  { %566 = vst.msk [vmem:[#allocation13] sm:$0xff] %vm565_vm10, %v563_v37 }
 0x496   :  { %1015 = dma.vmem_to_hbm [thread:$0]  %s1008_s27, 256, %s1010_s8, [#allocation4], %s1278_s29, %s1278_s29, %s1279_s30  }
 0x497   :  { %1275 = dma.done.wait [#allocation4], 256  }
 0x498   :  { %1276 = vsyncadd [#allocation4], 4294967040 }
 0x499   :  { %1020 = vsyncpa [#allocation3], 1 }
 0x49a   :  { %1021 = vsyncpa [#allocation6], 1 }
 0x49b   :  { %1022 = vsyncpa [#allocation9], 1 }
 0x49c   :  { %1023 = vsyncpa [#allocation12], 1 }
 0x49d   :  { %1024 = vsyncpa [#allocation4], 1 }

</bundles_post_ra>
